<compile_context>
chip_gen: v7x
topology: tpu7x:2x2x1
jax: 0.10.0
libtpu: 0.0.40
codegen_flags: <defaults>
</compile_context>

<pallas_src>
import jax
import jax.numpy as jnp
from jax.experimental import pallas as pl
from jax.experimental.pallas import tpu as pltpu

_LANE = 128  # vreg lane width


def _round_up(n, m):
    return ((n + m - 1) // m) * m


# --------------------------------------------------------------------------------------
# Kernel
# --------------------------------------------------------------------------------------
def dqn_kernel(x_ref, w1_ref, b1_ref, w2_ref, b2_ref, w3_ref, b3_ref, o_ref):
    bf = jnp.bfloat16
    # Layer 1: x is read from HBM once in its native dtype; bf16 cast happens on the VPU and
    # hides under the MXU/DMA slots. f32 accumulate on the MXU.
    h1 = jnp.dot(x_ref[...].astype(bf), w1_ref[...], preferred_element_type=jnp.float32)
    h1 = jnp.maximum(h1 + b1_ref[...], 0.0)          # bias + ReLU stay f32 (v5e VPU has no bf16)
    # Layer 2: Linear(128 -> 64, lane-padded to 128) + ReLU.
    h2 = jnp.dot(h1.astype(bf), w2_ref[...], preferred_element_type=jnp.float32)
    h2 = jnp.maximum(h2 + b2_ref[...], 0.0)
    # Layer 3: Linear(64 -> output_dim); compute on the lane-padded tile, store only the real
    # output_dim columns (unpadded f32 writeback to HBM).
    out = jnp.dot(h2.astype(bf), w3_ref[...], preferred_element_type=jnp.float32) + b3_ref[...]
    o_ref[...] = out[:, : o_ref.shape[1]].astype(o_ref.dtype)


# --------------------------------------------------------------------------------------
# One-time parameter prep (hoisted out of the per-step forward)
# --------------------------------------------------------------------------------------
def prepare_params(w1, b1, w2, b2, w3, b3):
    """Pads hidden/output dims to lane width and casts weights to bf16. Call once."""
    in_dim, h1_dim = w1.shape
    h2_dim = w2.shape[1]
    out_dim = w3.shape[1]
    h1_p = _round_up(h1_dim, _LANE)   # 128 -> 128
    h2_p = _round_up(h2_dim, _LANE)   # 64  -> 128
    out_p = _round_up(out_dim, _LANE)

    bf = jnp.bfloat16
    w1p = jnp.zeros((in_dim, h1_p), bf).at[:, :h1_dim].set(w1.astype(bf))
    b1p = jnp.zeros((1, h1_p), jnp.float32).at[:, :h1_dim].set(b1.reshape(1, -1))
    w2p = jnp.zeros((h1_p, h2_p), bf).at[:h1_dim, :h2_dim].set(w2.astype(bf))
    b2p = jnp.zeros((1, h2_p), jnp.float32).at[:, :h2_dim].set(b2.reshape(1, -1))
    w3p = jnp.zeros((h2_p, out_p), bf).at[:h2_dim, :out_dim].set(w3.astype(bf))
    b3p = jnp.zeros((1, out_p), jnp.float32).at[:, :out_dim].set(b3.reshape(1, -1))
    return (w1p, b1p, w2p, b2p, w3p, b3p), out_dim


# --------------------------------------------------------------------------------------
# Tile-size selection
# --------------------------------------------------------------------------------------
def _pick_tile_b(B, tile_b):
    # No larger than the (16-aligned) batch itself.
    tile_b = min(tile_b, _round_up(B, 16))
    # Ensure >= 2 grid steps when there is enough batch, so both v7x TensorCores get work.
    if B > 16:
        tile_b = min(tile_b, _round_up(pl.cdiv(B, 2), 16))
    return max(16, _round_up(tile_b, 16))


def _cap_tile_for_vmem(tile_b, in_dim, h1_p, h2_p, out_p, out_dim, budget=24 * 1024 * 1024):
    # Resident weights/biases (bf16 weights, f32 biases), conservatively counted double-buffered.
    weight_bytes = 2 * ((in_dim * h1_p + h1_p * h2_p + h2_p * out_p) * 2
                        + (h1_p + h2_p + out_p) * 4)
    while tile_b > 16:
        io_bytes = 2 * tile_b * (in_dim * 4 + out_dim * 4)          # x + out tiles, double-buffered
        live_bytes = tile_b * (h1_p + h2_p + out_p) * 4              # in-kernel f32 intermediates
        if weight_bytes + io_bytes + live_bytes <= budget:
            break
        tile_b //= 2
    return max(16, _round_up(tile_b, 16))


# --------------------------------------------------------------------------------------
# Forward
# --------------------------------------------------------------------------------------
def dqn_forward(x, prepared_params, out_dim, *, tile_b=1024):
    """x: [B, input_dim] float; prepared_params from prepare_params(). Returns [B, out_dim] f32."""
    w1p, b1p, w2p, b2p, w3p, b3p = prepared_params
    B, in_dim = x.shape
    h1_p = w1p.shape[1]
    h2_p = w2p.shape[1]
    out_p = w3p.shape[1]

    tile_b = _pick_tile_b(B, tile_b)
    tile_b = _cap_tile_for_vmem(tile_b, in_dim, h1_p, h2_p, out_p, out_dim)
    b_pad = _round_up(B, tile_b)
    if b_pad != B:
        # Tail-only pad in the producer dtype; padded rows are sliced away below.
        x = jnp.pad(x, ((0, b_pad - B), (0, 0)))

    grid = (b_pad // tile_b,)

    cost = pl.CostEstimate(
        flops=2 * b_pad * (in_dim * h1_p + h1_p * h2_p + h2_p * out_p),
        transcendentals=0,
        bytes_accessed=(
            x.size * x.dtype.itemsize + b_pad * out_dim * 4
            + (w1p.size + w2p.size + w3p.size) * 2
            + (b1p.size + b2p.size + b3p.size) * 4
        ),
    )

    const = lambda i: (0, 0)  # weights/biases: same block every grid step -> VMEM-resident
    out = pl.pallas_call(
        dqn_kernel,
        out_shape=jax.ShapeDtypeStruct((b_pad, out_dim), jnp.float32),
        grid=grid,
        in_specs=[
            pl.BlockSpec((tile_b, in_dim), lambda i: (i, 0)),  # x tile marches over the batch
            pl.BlockSpec((in_dim, h1_p), const),
            pl.BlockSpec((1, h1_p), const),
            pl.BlockSpec((h1_p, h2_p), const),
            pl.BlockSpec((1, h2_p), const),
            pl.BlockSpec((h2_p, out_p), const),
            pl.BlockSpec((1, out_p), const),
        ],
        out_specs=pl.BlockSpec((tile_b, out_dim), lambda i: (i, 0)),  # unpadded last dim
        compiler_params=pltpu.CompilerParams(
            dimension_semantics=("parallel",),   # batch grid shards across TCs on v7x
            vmem_limit_bytes=32 * 1024 * 1024,
        ),
        cost_estimate=cost,
    )(x, w1p, b1p, w2p, b2p, w3p, b3p)

    return out if b_pad == B else out[:B]


# --------------------------------------------------------------------------------------
# Params / references / test
# --------------------------------------------------------------------------------------
def init_params(key, input_dim, output_dim):
    """Deterministic synthetic init (Kaiming-uniform-ish like PyTorch Linear defaults)."""
    ks = jax.random.split(key, 6)

    def linear(kw, kb, fan_in, fan_out):
        bound = 1.0 / jnp.sqrt(jnp.float32(fan_in))
        # Stored as [in, out] (already transposed relative to PyTorch's [out, in]).
        w = jax.random.uniform(kw, (fan_in, fan_out), jnp.float32, -bound, bound)
        b = jax.random.uniform(kb, (1, fan_out), jnp.float32, -bound, bound)
        return w, b

    w1, b1 = linear(ks[0], ks[1], input_dim, 128)
    w2, b2 = linear(ks[2], ks[3], 128, 64)
    w3, b3 = linear(ks[4], ks[5], 64, output_dim)
    return w1, b1, w2, b2, w3, b3


def dqn_reference_f32(x, w1, b1, w2, b2, w3, b3):
    h1 = jnp.maximum(x @ w1 + b1, 0.0)
    h2 = jnp.maximum(h1 @ w2 + b2, 0.0)
    return h2 @ w3 + b3


def dqn_reference_bf16(x, w1, b1, w2, b2, w3, b3):
    """Mimics the kernel's bf16-operand / f32-accumulate numerics."""
    bf = jnp.bfloat16
    h1 = jnp.dot(x.astype(bf), w1.astype(bf), preferred_element_type=jnp.float32) + b1
    h1 = jnp.maximum(h1, 0.0)
    h2 = jnp.dot(h1.astype(bf), w2.astype(bf), preferred_element_type=jnp.float32) + b2
    h2 = jnp.maximum(h2, 0.0)
    return jnp.dot(h2.astype(bf), w3.astype(bf), preferred_element_type=jnp.float32) + b3


if __name__ == "__main__":
    key = jax.random.PRNGKey(0)
    k_x, k_p = jax.random.split(key)

    batch = 32
    input_dim = 32
    output_dim = 8

    x = jax.random.normal(k_x, (batch, input_dim), jnp.float32)
    params = init_params(k_p, input_dim, output_dim)

    # One-time parameter prep (hoisted out of the per-step forward).
    prepared, out_dim = prepare_params(*params)

    # At this toy size the tile selector picks tile_b=16 -> a 2-step batch grid.
    out = dqn_forward(x, prepared, out_dim)
    out = jax.block_until_ready(out)
    assert out.shape == (batch, output_dim)

    ref_bf16 = dqn_reference_bf16(x, *params)   # same numerics as the kernel
    ref_f32 = dqn_reference_f32(x, *params)     # original module (f32) semantics
    assert jnp.allclose(out, ref_bf16, atol=2e-3, rtol=2e-3), "mismatch vs bf16-emulated reference"
    assert jnp.allclose(out, ref_f32, atol=5e-2, rtol=5e-2), "mismatch vs f32 reference"

    print("KERNEL_OK")
</pallas_src>

<mosaic_0001>
module attributes {stable_mosaic.version = 11 : i64} {
  func.func @dqn_kernel(%arg0: i32, %arg1: memref<16x32xf32, #tpu.memory_space<vmem>>, %arg2: memref<32x128xbf16, #tpu.memory_space<vmem>>, %arg3: memref<1x128xf32, #tpu.memory_space<vmem>>, %arg4: memref<128x128xbf16, #tpu.memory_space<vmem>>, %arg5: memref<1x128xf32, #tpu.memory_space<vmem>>, %arg6: memref<128x128xbf16, #tpu.memory_space<vmem>>, %arg7: memref<1x128xf32, #tpu.memory_space<vmem>>, %arg8: memref<16x8xf32, #tpu.memory_space<vmem>>) attributes {dimension_semantics = [#tpu.dimension_semantics<parallel>], iteration_bounds = array<i64: 2>, scalar_prefetch = 0 : i64, scratch_operands = 0 : i64, tpu.core_type = #tpu.core_type<tc>, window_params = [{transform_indices = @transform_0, window_bounds = array<i64: 16, 32>}, {pipeline_mode = #tpu.pipeline_mode<synchronous>, transform_indices = @transform_1, window_bounds = array<i64: 32, 128>}, {pipeline_mode = #tpu.pipeline_mode<synchronous>, transform_indices = @transform_2, window_bounds = array<i64: 1, 128>}, {pipeline_mode = #tpu.pipeline_mode<synchronous>, transform_indices = @transform_3, window_bounds = array<i64: 128, 128>}, {pipeline_mode = #tpu.pipeline_mode<synchronous>, transform_indices = @transform_4, window_bounds = array<i64: 1, 128>}, {pipeline_mode = #tpu.pipeline_mode<synchronous>, transform_indices = @transform_5, window_bounds = array<i64: 128, 128>}, {pipeline_mode = #tpu.pipeline_mode<synchronous>, transform_indices = @transform_6, window_bounds = array<i64: 1, 128>}, {transform_indices = @transform_7, window_bounds = array<i64: 16, 8>}]} {
    %c0 = arith.constant 0 : index
    %c0_0 = arith.constant 0 : index
    %0 = vector.load %arg1[%c0, %c0_0] : memref<16x32xf32, #tpu.memory_space<vmem>>, vector<16x32xf32>
    %1 = arith.truncf %0 : vector<16x32xf32> to vector<16x32xbf16>
    %c0_1 = arith.constant 0 : index
    %c0_2 = arith.constant 0 : index
    %2 = vector.load %arg2[%c0_1, %c0_2] : memref<32x128xbf16, #tpu.memory_space<vmem>>, vector<32x128xbf16>
    %cst = arith.constant dense<0.000000e+00> : vector<16x128xf32>
    %3 = tpu.matmul %1, %2, %cst {dimension_numbers = #tpu.dot_dimension_numbers<[1], [0], [0], [1], [0, 0, 1, 1], [], []>} : vector<16x32xbf16>, vector<32x128xbf16>, vector<16x128xf32> -> vector<16x128xf32>
    %c0_3 = arith.constant 0 : index
    %c0_4 = arith.constant 0 : index
    %4 = vector.load %arg3[%c0_3, %c0_4] : memref<1x128xf32, #tpu.memory_space<vmem>>, vector<1x128xf32>
    %5 = vector.broadcast %4 : vector<1x128xf32> to vector<16x128xf32>
    %6 = arith.addf %3, %5 : vector<16x128xf32>
    %cst_5 = arith.constant 0.000000e+00 : f32
    %7 = vector.broadcast %cst_5 : f32 to vector<16x128xf32>
    %8 = arith.maximumf %6, %7 : vector<16x128xf32>
    %9 = arith.truncf %8 : vector<16x128xf32> to vector<16x128xbf16>
    %c0_6 = arith.constant 0 : index
    %c0_7 = arith.constant 0 : index
    %10 = vector.load %arg4[%c0_6, %c0_7] : memref<128x128xbf16, #tpu.memory_space<vmem>>, vector<128x128xbf16>
    %cst_8 = arith.constant dense<0.000000e+00> : vector<16x128xf32>
    %11 = tpu.matmul %9, %10, %cst_8 {dimension_numbers = #tpu.dot_dimension_numbers<[1], [0], [0], [1], [0, 0, 1, 1], [], []>} : vector<16x128xbf16>, vector<128x128xbf16>, vector<16x128xf32> -> vector<16x128xf32>
    %c0_9 = arith.constant 0 : index
    %c0_10 = arith.constant 0 : index
    %12 = vector.load %arg5[%c0_9, %c0_10] : memref<1x128xf32, #tpu.memory_space<vmem>>, vector<1x128xf32>
    %13 = vector.broadcast %12 : vector<1x128xf32> to vector<16x128xf32>
    %14 = arith.addf %11, %13 : vector<16x128xf32>
    %cst_11 = arith.constant 0.000000e+00 : f32
    %15 = vector.broadcast %cst_11 : f32 to vector<16x128xf32>
    %16 = arith.maximumf %14, %15 : vector<16x128xf32>
    %17 = arith.truncf %16 : vector<16x128xf32> to vector<16x128xbf16>
    %c0_12 = arith.constant 0 : index
    %c0_13 = arith.constant 0 : index
    %18 = vector.load %arg6[%c0_12, %c0_13] : memref<128x128xbf16, #tpu.memory_space<vmem>>, vector<128x128xbf16>
    %cst_14 = arith.constant dense<0.000000e+00> : vector<16x128xf32>
    %19 = tpu.matmul %17, %18, %cst_14 {dimension_numbers = #tpu.dot_dimension_numbers<[1], [0], [0], [1], [0, 0, 1, 1], [], []>} : vector<16x128xbf16>, vector<128x128xbf16>, vector<16x128xf32> -> vector<16x128xf32>
    %c0_15 = arith.constant 0 : index
    %c0_16 = arith.constant 0 : index
    %20 = vector.load %arg7[%c0_15, %c0_16] : memref<1x128xf32, #tpu.memory_space<vmem>>, vector<1x128xf32>
    %21 = vector.broadcast %20 : vector<1x128xf32> to vector<16x128xf32>
    %22 = arith.addf %19, %21 : vector<16x128xf32>
    %23 = vector.extract_strided_slice %22 {offsets = [0, 0], sizes = [16, 8], strides = [1, 1]} : vector<16x128xf32> to vector<16x8xf32>
    %c0_17 = arith.constant 0 : index
    %c0_18 = arith.constant 0 : index
    %24 = vector.load %arg8[%c0_17, %c0_18] : memref<16x8xf32, #tpu.memory_space<vmem>>, vector<16x8xf32>
    tpu.vector_store %arg8[%c0_17, %c0_18], %23 {strides = array<i32>} : memref<16x8xf32, #tpu.memory_space<vmem>>, vector<16x8xf32>,
    return
  }
  func.func @transform_0(%arg0: i32) -> (i32, i32) {
    %c0_i32 = arith.constant 0 : i32
    %c0_i32_0 = arith.constant 0 : i32
    return %arg0, %c0_i32 : i32, i32
  }
  func.func @transform_1(%arg0: i32) -> (i32, i32) {
    %c0_i32 = arith.constant 0 : i32
    %c0_i32_0 = arith.constant 0 : i32
    %c0_i32_1 = arith.constant 0 : i32
    return %c0_i32, %c0_i32_0 : i32, i32
  }
  func.func @transform_2(%arg0: i32) -> (i32, i32) {
    %c0_i32 = arith.constant 0 : i32
    %c0_i32_0 = arith.constant 0 : i32
    %c0_i32_1 = arith.constant 0 : i32
    return %c0_i32, %c0_i32_0 : i32, i32
  }
  func.func @transform_3(%arg0: i32) -> (i32, i32) {
    %c0_i32 = arith.constant 0 : i32
    %c0_i32_0 = arith.constant 0 : i32
    %c0_i32_1 = arith.constant 0 : i32
    return %c0_i32, %c0_i32_0 : i32, i32
  }
  func.func @transform_4(%arg0: i32) -> (i32, i32) {
    %c0_i32 = arith.constant 0 : i32
    %c0_i32_0 = arith.constant 0 : i32
    %c0_i32_1 = arith.constant 0 : i32
    return %c0_i32, %c0_i32_0 : i32, i32
  }
  func.func @transform_5(%arg0: i32) -> (i32, i32) {
    %c0_i32 = arith.constant 0 : i32
    %c0_i32_0 = arith.constant 0 : i32
    %c0_i32_1 = arith.constant 0 : i32
    return %c0_i32, %c0_i32_0 : i32, i32
  }
  func.func @transform_6(%arg0: i32) -> (i32, i32) {
    %c0_i32 = arith.constant 0 : i32
    %c0_i32_0 = arith.constant 0 : i32
    %c0_i32_1 = arith.constant 0 : i32
    return %c0_i32, %c0_i32_0 : i32, i32
  }
  func.func @transform_7(%arg0: i32) -> (i32, i32) {
    %c0_i32 = arith.constant 0 : i32
    %c0_i32_0 = arith.constant 0 : i32
    return %arg0, %c0_i32 : i32, i32
  }
}

</mosaic_0001>

<bundles_post_ra>
// kernel: tpu_custom_call.1
= control target key start
LH: loop header
LB: loop body
LE: loop exit
PB: predicated region body
PF: predicated region fallthrough
CT: control target
= control target key end

     0   :  { %12 = vsyncpa [#allocation3], 0  ;;  %s1411_s0 = inlined_call_operand.hbm [shape: f32[32,32], index: 0, kind: input, shape index: {}]   ;;  %s1412_s1 = inlined_call_operand.hbm [shape: bf16[32,128], index: 1, kind: input, shape index: {}]   ;;  %s1413_s2 = inlined_call_operand.vmem [shape: f32[1,128], index: 2, kind: input, shape index: {}]   ;;  %s1414_s3 = inlined_call_operand.hbm [shape: bf16[128,128], index: 3, kind: input, shape index: {}]   ;;  %s1415_s4 = inlined_call_operand.vmem [shape: f32[1,128], index: 4, kind: input, shape index: {}]   ;;  %s1416_s5 = inlined_call_operand.hbm [shape: bf16[128,128], index: 5, kind: input, shape index: {}]   ;;  %s1417_s6 = inlined_call_operand.vmem [shape: f32[1,128], index: 6, kind: input, shape index: {}]   ;;  %s1418_s7 = inlined_call_operand.vmem [shape: f32[32,8], index: 7, kind: output, shape index: {}]  }
   0x1   :  { %14 = vsyncpa [#allocation3 + $0x1], 0 }
   0x2   :  { %15 = vsyncpa [#allocation5], 0 }
   0x3   :  { %16 = vsyncpa [#allocation8], 0  ;;  %s1159_s24 = smov 0   ;;  %s1161_s25 = smov 0  }
   0x4   :  { %s1163_s26 = smov 0   ;;  %s1165_s27 = smov 0  }
   0x5 LB: > { %s746_s28 = sadd.s32 4294967295, %s1107_s27   ;;  %p42_p0 = scmp.ne.s32.totalorder %s1099_s25, %s1095_s24  ;;  %s1107_s27 = sphi %s1165_s27, %s1435_s27   ;;  %s1103_s26 = sphi %s1163_s26, %s1434_s26   ;;  %s1099_s25 = sphi %s1161_s25, %s1433_s25   ;;  %s1095_s24 = sphi %s1159_s24, %s1432_s24  }
   0x6   : > { %p1181_p1 = scmp.eq.s32.totalorder %s746_s28, 0  ;;  %p748_p2 = scmp.ge.s32.totalorder %s1107_s27, 1 }
   0x7   : > { %p205_p3 = scmp.lt.s32.totalorder %s1107_s27, 3  ;;  %s1109_s9 = smov [#allocation4]  }
   0x8   : > { %s1423_s29 = scalar_select %p1181_p1, 1, 0 }
   0x9   : > { %p1189_p4 = por %p1181_p1, %p42_p0  ;;  %p1193_p5 = pnand %p748_p2, %p205_p3 }
   0xa   : > { %s217_s10 = sshll.u32 %s1109_s9, 4  ;;  %s1110_s12 = smov [#allocation6]   ;;  %s1197_s10 = int_to_ptr.vmem [resolvable:$true] %s217_s10 }
   0xb   : > { %s1424_s30 = scalar_select %p1189_p4, 1, 0 }
   0xc   : > { %s1425_s8 = scalar_select %p1193_p5, 1, 0 }
   0xd   : > { %p871_p6 = pneg %p1193_p5  ;;  %s233_s13 = sshll.u32 %s1110_s12, 4  ;;  %s1207_s13 = int_to_ptr.vmem [resolvable:$true] %s233_s13 }
   0xe   : > { %s1111_s14 = smov [#allocation7]   ;;  %s951_s18 = scalar_lea.hbm %s1412_s1, 256 }
   0xf   : > { %p1203_p7 = pnand %p871_p6, %p1181_p1  ;;  %s1209_s15 = sshll.u32 %s1111_s14, 4  ;;  %s250_s15 = int_to_ptr.vmem [resolvable:$true] %s1209_s15 }
  0x10   : > { %p952_p8 = scmp.ne.s32.totalorder %s1412_s1, %s951_s18  ;;  %p958_p12 = scmp.lt.u32.totalorder %s951_s18, %s1412_s1 }
  0x11   : > { %p1219_p9 = pneg %p1203_p7 }
  0x13   : > { %p954_p10 = pnand %p1219_p9, %p952_p8 }
  0x15   : > { %p955_p11 = pneg %p954_p10 }
  0x17   : > { %p960_p13 = pnand %p958_p12, %p955_p11 }
  0x19   : > { %963 = shalt.err (!%p960_p13)
}
  0x1a   : > { %s964_s24 = scalar_lea.vmem %s1197_s10, 256  ;;  %p972_p6 = scmp.lt.s32.totalorder %s1197_s10, %s1197_s10 }
  0x1b   : > { %p965_p0 = scmp.ne.s32.totalorder %s1197_s10, %s964_s24  ;;  %p973_p1 = scmp.lt.s32.totalorder %s964_s24, %s964_s24 }
  0x1d   : > { %p967_p2 = pnand %p965_p0, %p1219_p9  ;;  %p974_p8 = por %p973_p1, %p972_p6 }
  0x1f   : > { %p968_p3 = pneg %p967_p2 }
  0x21   : > { %p975_p10 = pnand %p974_p8, %p968_p3 }
  0x23   : > { %978 = shalt.err (!%p975_p10)
}
  0x24   : > { %s1112_s9 = smov 64   ;;  %s1113_s12 = smov 4  }
  0x25   : > { %874 = dma.hbm_to_vmem [thread:$0]  (!%p1203_p7), %s1412_s1, 256, %s1197_s10, [#allocation5], %s1112_s9, %s1112_s9, %s1113_s12  }
  0x26   : > { %s979_s19 = scalar_lea.hbm %s1414_s3, 1024 }
  0x27   : > { %p980_p1 = scmp.ne.s32.totalorder %s1414_s3, %s979_s19  ;;  %p986_p13 = scmp.lt.u32.totalorder %s979_s19, %s1414_s3 }
  0x29   : > { %p982_p11 = pnand %p980_p1, %p1219_p9 }
  0x2b   : > { %p983_p12 = pneg %p982_p11 }
  0x2d   : > { %p988_p0 = pnand %p986_p13, %p983_p12 }
  0x2f   : > { %991 = shalt.err (!%p988_p0)
}
  0x30   : > { %s992_s10 = scalar_lea.vmem %s1207_s13, 1024  ;;  %p1000_p8 = scmp.lt.s32.totalorder %s1207_s13, %s1207_s13 }
  0x31   : > { %p993_p2 = scmp.ne.s32.totalorder %s1207_s13, %s992_s10  ;;  %p1001_p10 = scmp.lt.s32.totalorder %s992_s10, %s992_s10 }
  0x33   : > { %p995_p3 = pnand %p993_p2, %p1219_p9  ;;  %p1002_p1 = por %p1001_p10, %p1000_p8 }
  0x35   : > { %p996_p6 = pneg %p995_p3 }
  0x37   : > { %p1003_p11 = pnand %p1002_p1, %p996_p6 }
  0x39   : > { %1006 = shalt.err (!%p1003_p11)
}
  0x3a   : > { %877 = dma.hbm_to_vmem [thread:$0]  (!%p1203_p7), %s1414_s3, 1024, %s1207_s13, [#allocation5], %s1112_s9, %s1112_s9, %s1113_s12  }
  0x3b   : > { %s1007_s19 = scalar_lea.hbm %s1416_s5, 1024 }
  0x3c   : > { %p1008_p12 = scmp.ne.s32.totalorder %s1416_s5, %s1007_s19  ;;  %p1014_p2 = scmp.lt.u32.totalorder %s1007_s19, %s1416_s5 }
  0x3e   : > { %p1010_p13 = pnand %p1008_p12, %p1219_p9 }
  0x40   : > { %p1011_p0 = pneg %p1010_p13 }
  0x42   : > { %p1016_p3 = pnand %p1014_p2, %p1011_p0 }
  0x44   : > { %1019 = shalt.err (!%p1016_p3)
}
  0x45   : > { %s1020_s10 = scalar_lea.vmem %s250_s15, 1024  ;;  %p1028_p1 = scmp.lt.s32.totalorder %s250_s15, %s250_s15 }
  0x46   : > { %p1021_p6 = scmp.ne.s32.totalorder %s250_s15, %s1020_s10  ;;  %p1029_p11 = scmp.lt.s32.totalorder %s1020_s10, %s1020_s10 }
  0x48   : > { %p1023_p8 = pnand %p1021_p6, %p1219_p9  ;;  %p1030_p4 = por %p1029_p11, %p1028_p1 }
  0x4a   : > { %p1024_p10 = pneg %p1023_p8 }
  0x4c   : > { %p1031_p5 = pnand %p1030_p4, %p1024_p10 }
  0x4e   : > { %1034 = shalt.err (!%p1031_p5)
}
  0x4f   : > { %880 = dma.hbm_to_vmem [thread:$0]  (!%p1203_p7), %s1416_s5, 1024, %s250_s15, [#allocation8], %s1112_s9, %s1112_s9, %s1113_s12  }
  0x50   : > { %s1292_s21 = sadd.s32 1, %s1107_s27   ;;  %s29_s16 = sadd.s32 1, %s1103_s26 }
  0x51   : > { %s26_s11 = ssub.s32 %s1107_s27, %s1292_s21  ;;  %p36_p5 = scmp.ne.s32.totalorder %s1103_s26, %s1099_s25 }
  0x52   : > { %p27_p4 = scmp.eq.s32.totalorder %s26_s11, 0  ;;  %p37_p9 = scmp.eq.s32.totalorder %s1107_s27, 0 }
  0x53   : > { %p888_p12 = scmp.lt.s32.totalorder %s1107_s27, 2  ;;  %s266_s18 = sand.u32 1, %s1103_s26  }
  0x54   : > { %s1302_s17 = scalar_select %p27_p4, %s1103_s26, %s29_s16  }
  0x55   : > { %p38_p13 = por %p37_p9, %p36_p5  ;;  %s753_s19 = sshll.u32 %s266_s18, 4 }
  0x56   : > { %s787_s20 = sshll.u32 %s1107_s27, 8  ;;  %s270_s15 = scalar_lea.vmem [#allocation2], %s753_s19 }
  0x57   : > { %s1309_s24 = scalar_lea.hbm %s1411_s0, %s787_s20  ;;  %s277_s9 = sshll.u32 %s270_s15, 4  ;;  %s1311_s9 = int_to_ptr.vmem [resolvable:$true] %s277_s9 }
  0x58   : > { %p1313_p7 = pnand %p888_p12, %p38_p13  ;;  %s1317_s10 = scalar_lea.sflag [#allocation3], %s266_s18 }
  0x59   : > { %s1035_s13 = scalar_lea.hbm %s1309_s24, 256  ;;  %s1040_s16 = scalar_lea.hbm %s1411_s0, 512 }
  0x5a   : > { %p1036_p0 = scmp.ne.s32.totalorder %s1309_s24, %s1035_s13  ;;  %p1037_p2 = pneg %p1313_p7 }
  0x5b   : > { %p1041_p8 = scmp.lt.u32.totalorder %s1309_s24, %s1411_s0  ;;  %p1042_p10 = scmp.lt.u32.totalorder %s1040_s16, %s1035_s13 }
  0x5c   : > { %p1038_p3 = pnand %p1037_p2, %p1036_p0  ;;  %p1044_p11 = scmp.lt.u32.totalorder %s1035_s13, %s1309_s24 }
  0x5d   : > { %p1043_p1 = por %p1042_p10, %p1041_p8 }
  0x5e   : > { %p1039_p6 = pneg %p1038_p3 }
  0x5f   : > { %p1045_p4 = por %p1044_p11, %p1043_p1 }
  0x61   : > { %p1046_p5 = pnand %p1045_p4, %p1039_p6 }
  0x63   : > { %1049 = shalt.err (!%p1046_p5)
}
  0x64   : > { %s1050_s18 = scalar_lea.vmem %s1311_s9, 256  ;;  %s1114_s22 = smov [#allocation2]  }
  0x65   : > { %p1051_p9 = scmp.ne.s32.totalorder %s1311_s9, %s1050_s18  ;;  %s1055_s23 = sshll.u32 %s1114_s22, 4  ;;  %s1056_s23 = int_to_ptr.vmem [resolvable:$false] %s1055_s23 }
  0x66   : > { %s1057_s15 = scalar_lea.vmem %s1056_s23, 512  ;;  %p1058_p0 = scmp.lt.s32.totalorder %s1311_s9, %s1056_s23 }
  0x67   : > { %p1053_p12 = pnand %p1051_p9, %p1037_p2  ;;  %p1059_p3 = scmp.lt.s32.totalorder %s1057_s15, %s1050_s18 }
  0x69   : > { %p1054_p13 = pneg %p1053_p12  ;;  %p1060_p8 = por %p1059_p3, %p1058_p0 }
  0x6b   : > { %p1061_p10 = pnand %p1060_p8, %p1054_p13 }
  0x6d   : > { %1064 = shalt.err (!%p1061_p10)
}
  0x6e   : > { %s1115_s13 = smov 128   ;;  %s1116_s14 = smov 8  }
  0x6f   : > { %884 = dma.hbm_to_vmem [thread:$0]  (!%p1313_p7), %s1309_s24, 256, %s1311_s9, %s1317_s10, %s1115_s13, %s1115_s13, %s1116_s14  }
  0x70   : > { %p1429_p2 = scmp.ne.s32.totalorder %s1425_s8, 0 }
  0x71   : > { %s291_s11 = sand.u32 (!%p1429_p2), 1, %s1099_s25   ;;  %p1430_p6 = scmp.ne.s32.totalorder (!%p1429_p2), %s1424_s30, 0 }
  0x72   : > { %289 = sbr.rel (%p1429_p2) target bundleno = 794 (0x31a), region = 48  ;;  %s757_s16 = sshll.u32 (!%p1429_p2), %s291_s11, 4 }
  0x73   : > { %s292_s19 = scalar_lea.sflag (!%p1429_p2), [#allocation3], %s291_s11  ;;  %s295_s20 = scalar_lea.vmem (!%p1429_p2), [#allocation2], %s757_s16 }
  0x79   : > { %1082 = dma.done.wait (%p1430_p6), %s292_s19, 256  }
  0x7a   : > { %1084 = vsyncadd (%p1430_p6), %s292_s19, 4294967040  ;;  %p1431_p1 = scmp.ne.s32.totalorder %s1423_s29, 0 }
  0x7c   : > { %1086 = dma.done.wait (%p1431_p1), [#allocation5], 1280  }
  0x7d   : > { %1088 = vsyncadd (%p1431_p1), [#allocation5], 4294966016 }
  0x7e   : > { %1090 = dma.done.wait (%p1431_p1), [#allocation8], 1024  }
  0x7f   : > { %1092 = vsyncadd (%p1431_p1), [#allocation8], 4294966272  ;;  %v1117_v0 = vmov 0.0   ;;  %vm1118_vm0 = vmmov 0   ;;  %v933_v1 = vld [vmem:[#allocation4] sm:$0xff]   ;;  %v934_v2 = vld [vmem:[#allocation4 + $0x8] sm:$0xff]  }
  0x80   : > { %809 = vmatprep.subr.bf16.mxu0 %v1117_v0  ;;  %813 = vmatprep.mubr.msk.bf16.mxu0 %vm1118_vm0, %v1117_v0  ;;  %v346_v3 = vld [vmem:[%s295_s20] sm:$0xff]  ;;  %v347_v4 = vld [vmem:[%s295_s20 + $0x8] sm:$0xff]  ;;  %vm372_vm1 = vcmask 261120   ;;  %s761_s9 = sshll.u32 %s746_s28, 1  ;;  %vm647_vm2 = vcmask 64512  }
  0x81   : > { %817 = vmatprep.subr.bf16.mxu1 %v1117_v0  ;;  %833 = vmatprep.mubr.msk.bf16.mxu1 %vm1118_vm0, %v1117_v0  ;;  %v935_v5 = vld [vmem:[#allocation6] sm:$0xff]   ;;  %v348_v6 = vpack.c.bf16 %v347_v4, %v346_v3  ;;  %v936_v7 = vld [vmem:[#allocation6 + $0x8] sm:$0xff]   ;;  %v937_v8 = vld [vmem:[#allocation6 + $0x10] sm:$0xff]   ;;  %p340_p7 = scmp.lt.s32.totalorder %s761_s9, 3 }
  0x82   : > { %810 = vmatpush3.bf16.msra.mxu0 %v933_v1  ;;  %818 = vmatpush3.bf16.msra.mxu1 %v935_v5  ;;  %v938_v9 = vld [vmem:[#allocation6 + $0x18] sm:$0xff]   ;;  %v939_v10 = vld [vmem:[#allocation6 + $0x20] sm:$0xff]   ;;  %v940_v11 = vld [vmem:[#allocation6 + $0x28] sm:$0xff]  }
  0x83   : > { %811 = vmatprep.subr.bf16.mxu0 %v1117_v0  ;;  %819 = vmatprep.subr.bf16.mxu1 %v1117_v0  ;;  %v941_v12 = vld [vmem:[#allocation6 + $0x30] sm:$0xff]   ;;  %v942_v13 = vld [vmem:[#allocation6 + $0x38] sm:$0xff]   ;;  %v943_v14 = vld [vmem:[#allocation7] sm:$0xff]   ;;  %s1437_s9 = smov (!%p340_p7, %s761_s9), 3 }
  0x84   : > { %v944_v15 = vld [vmem:[#allocation7 + $0x8] sm:$0xff]   ;;  %v945_v16 = vld [vmem:[#allocation7 + $0x10] sm:$0xff]   ;;  %v946_v17 = vld [vmem:[#allocation7 + $0x18] sm:$0xff]   ;;  %s762_s12 = sshll.u32 %s1437_s9, 3 }
  0x85   : > { %v947_v18 = vld [vmem:[#allocation7 + $0x20] sm:$0xff]   ;;  %v948_v19 = vld [vmem:[#allocation7 + $0x28] sm:$0xff]   ;;  %v763_v20 = vld [vmem:[%s1413_s2] ss:$0 sm:$0xff]  ;;  %s343_s15 = scalar_lea.vmem %s1418_s7, %s762_s12 }
  0x86   : > { %812 = vmatpush3.bf16.msra.mxu0 %v934_v2  ;;  %820 = vmatpush3.bf16.msra.mxu1 %v936_v7  ;;  %v949_v30 = vld [vmem:[#allocation7 + $0x30] sm:$0xff]   ;;  %v950_v31 = vld [vmem:[#allocation7 + $0x38] sm:$0xff]  }
  0x87   : > { %837 = vmatprep.subr.bf16.mxu0 %v1117_v0  ;;  %821 = vmatprep.subr.bf16.mxu1 %v1117_v0  ;;  %v767_v32 = vld [vmem:[%s1415_s4] ss:$0 sm:$0xff] }
  0x88   : > { %v776_v42 = vld [vmem:[%s1417_s6] ss:$0 sm:$0xff] }
  0x89   : > { %814 = vmatmul.mubr.msk.bf16.vlgmr.msra.gmra.mrb[0].mxu0 %vm372_vm1, %v348_v6 }
  0x8a   : > { %853 = vmatprep.mubr.msk.bf16.mxu0 %vm1118_vm0, %v1117_v0  ;;  %822 = vmatpush3.bf16.msra.mxu1 %v937_v8 }
  0x8b   : > { %823 = vmatprep.subr.bf16.mxu1 %v1117_v0  ;;  %838 = vmatpush3.bf16.msra.mxu0 %v943_v14 }
  0x8c   : > { %839 = vmatprep.subr.bf16.mxu0 %v1117_v0 }
  0x8e   : > { %824 = vmatpush3.bf16.msra.mxu1 %v938_v9 }
  0x8f   : > { %825 = vmatprep.subr.bf16.mxu1 %v1117_v0  ;;  %840 = vmatpush3.bf16.msra.mxu0 %v944_v15 }
  0x90   : > { %841 = vmatprep.subr.bf16.mxu0 %v1117_v0 }
  0x92   : > { %826 = vmatpush3.bf16.msra.mxu1 %v939_v10 }
  0x93   : > { %827 = vmatprep.subr.bf16.mxu1 %v1117_v0  ;;  %842 = vmatpush3.bf16.msra.mxu0 %v945_v16 }
  0x94   : > { %843 = vmatprep.subr.bf16.mxu0 %v1117_v0 }
  0x96   : > { %828 = vmatpush3.bf16.msra.mxu1 %v940_v11 }
  0x97   : > { %829 = vmatprep.subr.bf16.mxu1 %v1117_v0  ;;  %844 = vmatpush3.bf16.msra.mxu0 %v946_v17 }
  0x98   : > { %845 = vmatprep.subr.bf16.mxu0 %v1117_v0 }
  0x9a   : > { %830 = vmatpush3.bf16.msra.mxu1 %v941_v12 }
  0x9b   : > { %831 = vmatprep.subr.bf16.mxu1 %v1117_v0  ;;  %846 = vmatpush3.bf16.msra.mxu0 %v947_v18 }
  0x9c   : > { %847 = vmatprep.subr.bf16.mxu0 %v1117_v0 }
  0x9e   : > { %832 = vmatpush3.bf16.msra.mxu1 %v942_v13 }
  0x9f   : > { %848 = vmatpush3.bf16.msra.mxu0 %v948_v19 }
  0xa0   : > { %849 = vmatprep.subr.bf16.mxu0 %v1117_v0 }
  0xa3   : > { %850 = vmatpush3.bf16.msra.mxu0 %v949_v30 }
  0xa4   : > { %851 = vmatprep.subr.bf16.mxu0 %v1117_v0 }
  0xa7   : > { %852 = vmatpush3.bf16.msra.mxu0 %v950_v31 }
 0x15c   : > { %v410_v21 = vpop.f32.mrb[0].mxu0 }
 0x15d   : > { %v411_v22 = vadd.f32 %v763_v20, %v410_v21  ;;  %v815_v23 = vpop.f32.mrb[1].mxu0 }
 0x15e   : > { %v413_v24 = vpop.f32.mrb[2].mxu0 }
 0x15f   : > { %v414_v25 = vadd.f32 %v763_v20, %v413_v24  ;;  %v816_v26 = vpop.f32.mrb[3].mxu0  ;;  %v417_v27 = vmax.f32 %v411_v22, 0.0 }
 0x161   : > { %v418_v28 = vmax.f32 %v414_v25, 0.0 }
 0x163   : > { %v419_v29 = vpack.c.bf16 %v418_v28, %v417_v27 }
 0x165   : > { %834 = vmatmul.mubr.bf16.vlgmr.msra.gmra.mrb[0].mxu1 %v419_v29 }
 0x238   : > { %v525_v33 = vpop.f32.mrb[0].mxu1 }
 0x239   : > { %v526_v34 = vadd.f32 %v767_v32, %v525_v33  ;;  %v835_v35 = vpop.f32.mrb[1].mxu1 }
 0x23a   : > { %v528_v36 = vpop.f32.mrb[2].mxu1 }
 0x23b   : > { %v529_v37 = vadd.f32 %v767_v32, %v528_v36  ;;  %v836_v38 = vpop.f32.mrb[3].mxu1  ;;  %v532_v39 = vmax.f32 %v526_v34, 0.0 }
 0x23d   : > { %v533_v40 = vmax.f32 %v529_v37, 0.0 }
 0x23f   : > { %v534_v41 = vpack.c.bf16 %v533_v40, %v532_v39 }
 0x241   : > { %854 = vmatmul.mubr.bf16.vlgmr.msra.gmra.mrb[4].mxu0 %v534_v41 }
 0x314   : > { %v640_v43 = vpop.f32.mrb[4].mxu0 }
 0x315   : > { %v641_v44 = vadd.f32 %v776_v42, %v640_v43  ;;  %v855_v45 = vpop.f32.mrb[5].mxu0 }
 0x316   : > { %v643_v46 = vpop.f32.mrb[6].mxu0 }
 0x317   : > { %648 = vst.msk [vmem:[%s343_s15] sm:$0xff] %vm647_vm2, %v641_v44  ;;  %v644_v47 = vadd.f32 %v776_v42, %v643_v46  ;;  %v856_v48 = vpop.f32.mrb[7].mxu0 }
 0x319   : > { %649 = vst.msk [vmem:[%s343_s15 + $0x8] sm:$0xff] %vm647_vm2, %v644_v47 }
 0x31a PF: > { %p19_p11 = scmp.ge.s32.totalorder %s1292_s21, 4   ;;  %s1432_s24 = smov %s1099_s25 }
 0x31b   : > { %s1433_s25 = smov %s1103_s26  ;;  %s1434_s26 = smov %s1302_s17 }
 0x31c   : > { %s1435_s27 = smov %s1292_s21  ;;  %21 = sbr.rel (!%p19_p11) target bundleno = 5 (0x5), region = 100 }
 0x323   :  { %672 = vsyncpa [#allocation3], 1 }
 0x324   :  { %674 = vsyncpa [#allocation3 + $0x1], 1 }
 0x325   :  { %675 = vsyncpa [#allocation5], 1 }
 0x326   :  { %676 = vsyncpa [#allocation8], 1 }

</bundles_post_ra>
